<compile_context>
chip_gen: v6e
topology: v6e:2x2x1
jax: 0.10.0
libtpu: 0.0.40
codegen_flags: <defaults>
</compile_context>

<pallas_src>
import functools

import jax
import jax.numpy as jnp
from jax.experimental import pallas as pl
from jax.experimental.pallas import tpu as pltpu

NEG_SLOPE = 0.01  # F.leaky_relu default
MASK_BIAS = -1e9


# ----------------------------------------------------------------------------
# Fused Pallas kernel
# ----------------------------------------------------------------------------
def dgi_fused_kernel(x_ref, bias_ref, w1_ref, w2_ref, dw_ref, db_ref,
                     h1_ref, sc_ref, *, n, num_heads, hid, out_dim):
    """Whole DGI forward for a small, VMEM-resident graph.

    x_ref   : (2N, Din)   rows [0,N) = features, rows [N,2N) = corrupted features
    bias_ref: (N, N)      bf16 additive mask bias: 0 where edge j->i, -1e9 otherwise
    w1_ref  : (Din, H*hid + 2H)   [W_cat | W@a_src per head | W@a_dst per head]
    w2_ref  : (H*hid, out + 2)    [W2 | W2@a2_src | W2@a2_dst]
    dw_ref  : (out, out)  bilinear discriminator weight A[0]
    db_ref  : (1, 1)      bilinear bias
    h1_ref  : (N, out)    positive-view embeddings
    sc_ref  : (2N, 1)     rows [0,N) = sc_1, rows [N,2N) = sc_2
    """
    bias = bias_ref[...].astype(jnp.float32)                             # (N, N)

    def attention_aggregate(zs, nheads, dout):
        # zs: (N, nheads*dout + 2*nheads) for ONE view
        z = zs[:, : nheads * dout]
        s_src = zs[:, nheads * dout: nheads * dout + nheads]             # (N, H)
        s_dst = zs[:, nheads * dout + nheads:]                           # (N, H)
        outs = []
        for h in range(nheads):
            # e[i, j] = leaky_relu(a_src . z_j + a_dst . z_i)  (edge j -> i)
            e = s_dst[:, h:h + 1] + s_src[:, h:h + 1].T                  # (N, N)
            e = jnp.where(e > 0, e, NEG_SLOPE * e)
            e = e + bias                                                 # mask (additive)
            # softmax over incoming edges; denom >= 1 (max entry contributes exp(0))
            p = jnp.exp(e - jnp.max(e, axis=-1, keepdims=True))
            denom = jnp.sum(p, axis=-1, keepdims=True)
            alpha = p * pl.reciprocal(denom, approx=True)
            outs.append(
                jnp.dot(alpha.astype(jnp.bfloat16),
                        z[:, h * dout:(h + 1) * dout].astype(jnp.bfloat16),
                        preferred_element_type=jnp.float32))             # (N, dout)
        return jnp.concatenate(outs, axis=1) if nheads > 1 else outs[0]

    def gat_layer(x2n, w_aug_ref, nheads, dout, apply_elu):
        # One matmul for both views; yields z and the folded attention scores together.
        zs = jnp.dot(x2n, w_aug_ref[...], preferred_element_type=jnp.float32)
        out = jnp.concatenate(
            [attention_aggregate(zs[:n], nheads, dout),
             attention_aggregate(zs[n:], nheads, dout)], axis=0)         # (2N, H*dout)
        if apply_elu:  # F.elu(alpha=1)
            out = jnp.where(out > 0, out, jnp.exp(jnp.minimum(out, 0.0)) - 1.0)
        return out

    x = x_ref[...]                                                       # (2N, Din)
    h = gat_layer(x, w1_ref, num_heads, hid, True)                       # (2N, H*hid)
    h = gat_layer(h, w2_ref, 1, out_dim, False)                          # (2N, out)

    h1 = h[:n]                                                           # positive view
    h1_ref[...] = h1

    # AvgReadout + sigmoid + Bilinear discriminator (out_features = 1)
    c = jax.nn.sigmoid(jnp.mean(h1, axis=0, keepdims=True))              # (1, out)
    wc = jnp.dot(dw_ref[...], c.T, preferred_element_type=jnp.float32)   # (out, 1)
    sc = jnp.dot(h, wc, preferred_element_type=jnp.float32) + db_ref[...]  # (2N, 1)
    sc_ref[...] = sc


# ----------------------------------------------------------------------------
# pallas_call wrapper
# ----------------------------------------------------------------------------
def build_fused_weights(params):
    # layer 1: fuse heads and fold attention vectors into the feature matmul
    w1_cat = jnp.concatenate([w for (w, _) in params["layer1"]], axis=1)          # (in, H*hid)
    wa_src = jnp.concatenate([w @ a[:, 0:1] for (w, a) in params["layer1"]], axis=1)  # (in, H)
    wa_dst = jnp.concatenate([w @ a[:, 1:2] for (w, a) in params["layer1"]], axis=1)  # (in, H)
    w1_aug = jnp.concatenate([w1_cat, wa_src, wa_dst], axis=1)                    # (in, H*hid+2H)
    # layer 2: single head
    w2, a2 = params["layer2"]
    w2_aug = jnp.concatenate([w2, w2 @ a2], axis=1)                               # (H*hid, out+2)
    return w1_aug, w2_aug


def dgi_forward(features, tranfeatures, adj, params):
    N, in_dim = features.shape
    num_heads = len(params["layer1"])
    hid = params["layer1"][0][0].shape[1]
    out_dim = params["layer2"][0].shape[1]

    w1_aug, w2_aug = build_fused_weights(params)
    x = jnp.concatenate([features, tranfeatures], axis=0)                 # (2N, in)
    # additive mask bias in bf16 (halves the dominant N*N DMA stream)
    bias = jnp.where(adj > 0, 0.0, MASK_BIAS).astype(jnp.bfloat16)

    kernel = functools.partial(dgi_fused_kernel, n=N, num_heads=num_heads,
                               hid=hid, out_dim=out_dim)
    h_1, sc = pl.pallas_call(
        kernel,
        out_shape=(
            jax.ShapeDtypeStruct((N, out_dim), jnp.float32),
            jax.ShapeDtypeStruct((2 * N, 1), jnp.float32),
        ),
        grid=(1,),
        in_specs=[
            pl.BlockSpec((2 * N, in_dim), lambda i: (0, 0)),
            pl.BlockSpec((N, N), lambda i: (0, 0)),
            pl.BlockSpec(w1_aug.shape, lambda i: (0, 0)),
            pl.BlockSpec(w2_aug.shape, lambda i: (0, 0)),
            pl.BlockSpec((out_dim, out_dim), lambda i: (0, 0)),
            pl.BlockSpec((1, 1), lambda i: (0, 0)),
        ],
        out_specs=(
            pl.BlockSpec((N, out_dim), lambda i: (0, 0)),
            pl.BlockSpec((2 * N, 1), lambda i: (0, 0)),
        ),
        compiler_params=pltpu.CompilerParams(dimension_semantics=("arbitrary",)),
    )(x, bias, w1_aug, w2_aug, params["disc_w"], params["disc_b"])

    # rows [0,N) of sc are sc_1, rows [N,2N) are sc_2  ->  torch.cat((sc_1, sc_2), 0)
    logits = sc.reshape(-1)
    return h_1, logits


# ----------------------------------------------------------------------------
# Parameter setup (matches the PyTorch init up to RNG)
# ----------------------------------------------------------------------------
def _xavier_normal(key, shape, gain):
    fan_out, fan_in = shape[0], shape[1]
    std = gain * jnp.sqrt(2.0 / (fan_in + fan_out))
    return std * jax.random.normal(key, shape, dtype=jnp.float32)


def _xavier_uniform(key, shape):
    fan_out, fan_in = shape[0], shape[1]
    limit = jnp.sqrt(6.0 / (fan_in + fan_out))
    return jax.random.uniform(key, shape, dtype=jnp.float32, minval=-limit, maxval=limit)


def init_dgi_params(key, in_dim, hidden_dim, out_dim, num_heads):
    gain = jnp.sqrt(2.0)  # nn.init.calculate_gain('relu')
    keys = jax.random.split(key, 2 * num_heads + 3)
    params = {"layer1": [], "layer2": None}

    # layer1: num_heads GAT heads, in_dim -> hidden_dim
    for h in range(num_heads):
        w = _xavier_normal(keys[2 * h], (hidden_dim, in_dim), gain).T          # (in, hid)
        a_full = _xavier_normal(keys[2 * h + 1], (1, 2 * hidden_dim), gain)[0]
        a = jnp.stack([a_full[:hidden_dim], a_full[hidden_dim:]], axis=1)      # (hid, 2)
        params["layer1"].append((w, a))

    # layer2: single head, hidden_dim*num_heads -> out_dim
    l2_in = hidden_dim * num_heads
    w2 = _xavier_normal(keys[2 * num_heads], (out_dim, l2_in), gain).T         # (l2_in, out)
    a2_full = _xavier_normal(keys[2 * num_heads + 1], (1, 2 * out_dim), gain)[0]
    a2 = jnp.stack([a2_full[:out_dim], a2_full[out_dim:]], axis=1)             # (out, 2)
    params["layer2"] = (w2, a2)

    # discriminator: nn.Bilinear(out_dim, out_dim, 1), xavier_uniform weight, zero bias
    params["disc_w"] = _xavier_uniform(keys[2 * num_heads + 2], (out_dim, out_dim))
    params["disc_b"] = jnp.zeros((1, 1), dtype=jnp.float32)
    return params


# ----------------------------------------------------------------------------
if __name__ == "__main__":
    N, in_dim, hidden_dim, out_dim, num_heads = 16, 32, 8, 16, 2

    key = jax.random.PRNGKey(0)
    k_feat, k_perm, k_adj, k_param = jax.random.split(key, 4)

    features = jax.random.normal(k_feat, (N, in_dim), dtype=jnp.float32)
    tranfeatures = features[jax.random.permutation(k_perm, N)]           # corrupted view

    adj = (jax.random.uniform(k_adj, (N, N)) < 0.3).astype(jnp.float32)
    adj = jnp.maximum(adj, jnp.eye(N, dtype=jnp.float32))                # self-loops

    params = init_dgi_params(k_param, in_dim, hidden_dim, out_dim, num_heads)

    h_1, logits = dgi_forward(features, tranfeatures, adj, params)
    jax.block_until_ready((h_1, logits))

    assert h_1.shape == (N, out_dim)
    assert logits.shape == (2 * N,)
    assert bool(jnp.all(jnp.isfinite(h_1))) and bool(jnp.all(jnp.isfinite(logits)))
    print("KERNEL_OK")
</pallas_src>

<mosaic_0001>
module attributes {stable_mosaic.version = 11 : i64} {
  func.func @dgi_fused_kernel(%arg0: i32, %arg1: memref<32x32xf32, #tpu.memory_space<vmem>>, %arg2: memref<16x16xbf16, #tpu.memory_space<vmem>>, %arg3: memref<32x20xf32, #tpu.memory_space<vmem>>, %arg4: memref<16x18xf32, #tpu.memory_space<vmem>>, %arg5: memref<16x16xf32, #tpu.memory_space<vmem>>, %arg6: memref<1x1xf32, #tpu.memory_space<vmem>>, %arg7: memref<16x16xf32, #tpu.memory_space<vmem>>, %arg8: memref<32x1xf32, #tpu.memory_space<vmem>>) attributes {dimension_semantics = [#tpu.dimension_semantics<arbitrary>], iteration_bounds = array<i64: 1>, scalar_prefetch = 0 : i64, scratch_operands = 0 : i64, tpu.core_type = #tpu.core_type<tc>, window_params = [{pipeline_mode = #tpu.pipeline_mode<synchronous>, transform_indices = @transform_0, window_bounds = array<i64: 32, 32>}, {pipeline_mode = #tpu.pipeline_mode<synchronous>, transform_indices = @transform_1, window_bounds = array<i64: 16, 16>}, {pipeline_mode = #tpu.pipeline_mode<synchronous>, transform_indices = @transform_2, window_bounds = array<i64: 32, 20>}, {pipeline_mode = #tpu.pipeline_mode<synchronous>, transform_indices = @transform_3, window_bounds = array<i64: 16, 18>}, {pipeline_mode = #tpu.pipeline_mode<synchronous>, transform_indices = @transform_4, window_bounds = array<i64: 16, 16>}, {pipeline_mode = #tpu.pipeline_mode<synchronous>, transform_indices = @transform_5, window_bounds = array<i64: 1, 1>}, {pipeline_mode = #tpu.pipeline_mode<synchronous>, transform_indices = @transform_6, window_bounds = array<i64: 16, 16>}, {pipeline_mode = #tpu.pipeline_mode<synchronous>, transform_indices = @transform_7, window_bounds = array<i64: 32, 1>}]} {
    %c0 = arith.constant 0 : index
    %c0_0 = arith.constant 0 : index
    %0 = vector.load %arg2[%c0, %c0_0] : memref<16x16xbf16, #tpu.memory_space<vmem>>, vector<16x16xbf16>
    %1 = arith.extf %0 : vector<16x16xbf16> to vector<16x16xf32>
    %c0_1 = arith.constant 0 : index
    %c0_2 = arith.constant 0 : index
    %2 = vector.load %arg1[%c0_1, %c0_2] : memref<32x32xf32, #tpu.memory_space<vmem>>, vector<32x32xf32>
    %c0_3 = arith.constant 0 : index
    %c0_4 = arith.constant 0 : index
    %3 = vector.load %arg3[%c0_3, %c0_4] : memref<32x20xf32, #tpu.memory_space<vmem>>, vector<32x20xf32>
    %cst = arith.constant dense<0.000000e+00> : vector<32x20xf32>
    %4 = tpu.matmul %2, %3, %cst {dimension_numbers = #tpu.dot_dimension_numbers<[1], [0], [0], [1], [0, 0, 1, 1], [], []>} : vector<32x32xf32>, vector<32x20xf32>, vector<32x20xf32> -> vector<32x20xf32>
    %5 = vector.extract_strided_slice %4 {offsets = [0, 0], sizes = [16, 20], strides = [1, 1]} : vector<32x20xf32> to vector<16x20xf32>
    %6 = vector.extract_strided_slice %5 {offsets = [0, 0], sizes = [16, 16], strides = [1, 1]} : vector<16x20xf32> to vector<16x16xf32>
    %7 = vector.extract_strided_slice %5 {offsets = [0, 16], sizes = [16, 2], strides = [1, 1]} : vector<16x20xf32> to vector<16x2xf32>
    %8 = vector.extract_strided_slice %5 {offsets = [0, 18], sizes = [16, 2], strides = [1, 1]} : vector<16x20xf32> to vector<16x2xf32>
    %9 = vector.extract_strided_slice %8 {offsets = [0, 0], sizes = [16, 1], strides = [1, 1]} : vector<16x2xf32> to vector<16x1xf32>
    %10 = vector.extract_strided_slice %7 {offsets = [0, 0], sizes = [16, 1], strides = [1, 1]} : vector<16x2xf32> to vector<16x1xf32>
    %11 = tpu.transpose %10, [1, 0] : vector<16x1xf32> -> vector<1x16xf32>
    %12 = vector.broadcast %9 : vector<16x1xf32> to vector<16x16xf32>
    %13 = vector.broadcast %11 : vector<1x16xf32> to vector<16x16xf32>
    %14 = arith.addf %12, %13 : vector<16x16xf32>
    %cst_5 = arith.constant 0.000000e+00 : f32
    %15 = vector.broadcast %cst_5 : f32 to vector<16x16xf32>
    %16 = arith.cmpf ogt, %14, %15 : vector<16x16xf32>
    %cst_6 = arith.constant 0.00999999977 : f32
    %17 = vector.broadcast %cst_6 : f32 to vector<16x16xf32>
    %18 = arith.mulf %17, %14 : vector<16x16xf32>
    %19 = arith.select %16, %14, %18 : vector<16x16xi1>, vector<16x16xf32>
    %20 = arith.addf %19, %1 : vector<16x16xf32>
    %cst_7 = arith.constant dense<0xFF800000> : vector<16xf32>
    %21 = vector.multi_reduction <maximumf>, %20, %cst_7 [1] : vector<16x16xf32> to vector<16xf32>
    %22 = vector.shape_cast %21 : vector<16xf32> to vector<16x1xf32>
    %23 = vector.broadcast %22 : vector<16x1xf32> to vector<16x16xf32>
    %24 = arith.subf %20, %23 : vector<16x16xf32>
    %25 = math.exp %24 : vector<16x16xf32>
    %cst_8 = arith.constant dense<0.000000e+00> : vector<16xf32>
    %26 = vector.multi_reduction <add>, %25, %cst_8 [1] : vector<16x16xf32> to vector<16xf32>
    %27 = vector.shape_cast %26 : vector<16xf32> to vector<16x1xf32>
    %28 = tpu.reciprocal %27 {approx = true} : vector<16x1xf32> -> vector<16x1xf32>
    %29 = vector.broadcast %28 : vector<16x1xf32> to vector<16x16xf32>
    %30 = arith.mulf %25, %29 : vector<16x16xf32>
    %31 = arith.truncf %30 : vector<16x16xf32> to vector<16x16xbf16>
    %32 = vector.extract_strided_slice %6 {offsets = [0, 0], sizes = [16, 8], strides = [1, 1]} : vector<16x16xf32> to vector<16x8xf32>
    %33 = arith.truncf %32 : vector<16x8xf32> to vector<16x8xbf16>
    %cst_9 = arith.constant dense<0.000000e+00> : vector<16x8xf32>
    %34 = tpu.matmul %31, %33, %cst_9 {dimension_numbers = #tpu.dot_dimension_numbers<[1], [0], [0], [1], [0, 0, 1, 1], [], []>} : vector<16x16xbf16>, vector<16x8xbf16>, vector<16x8xf32> -> vector<16x8xf32>
    %35 = vector.extract_strided_slice %8 {offsets = [0, 1], sizes = [16, 1], strides = [1, 1]} : vector<16x2xf32> to vector<16x1xf32>
    %36 = vector.extract_strided_slice %7 {offsets = [0, 1], sizes = [16, 1], strides = [1, 1]} : vector<16x2xf32> to vector<16x1xf32>
    %37 = tpu.transpose %36, [1, 0] : vector<16x1xf32> -> vector<1x16xf32>
    %38 = vector.broadcast %35 : vector<16x1xf32> to vector<16x16xf32>
    %39 = vector.broadcast %37 : vector<1x16xf32> to vector<16x16xf32>
    %40 = arith.addf %38, %39 : vector<16x16xf32>
    %cst_10 = arith.constant 0.000000e+00 : f32
    %41 = vector.broadcast %cst_10 : f32 to vector<16x16xf32>
    %42 = arith.cmpf ogt, %40, %41 : vector<16x16xf32>
    %cst_11 = arith.constant 0.00999999977 : f32
    %43 = vector.broadcast %cst_11 : f32 to vector<16x16xf32>
    %44 = arith.mulf %43, %40 : vector<16x16xf32>
    %45 = arith.select %42, %40, %44 : vector<16x16xi1>, vector<16x16xf32>
    %46 = arith.addf %45, %1 : vector<16x16xf32>
    %cst_12 = arith.constant dense<0xFF800000> : vector<16xf32>
    %47 = vector.multi_reduction <maximumf>, %46, %cst_12 [1] : vector<16x16xf32> to vector<16xf32>
    %48 = vector.shape_cast %47 : vector<16xf32> to vector<16x1xf32>
    %49 = vector.broadcast %48 : vector<16x1xf32> to vector<16x16xf32>
    %50 = arith.subf %46, %49 : vector<16x16xf32>
    %51 = math.exp %50 : vector<16x16xf32>
    %cst_13 = arith.constant dense<0.000000e+00> : vector<16xf32>
    %52 = vector.multi_reduction <add>, %51, %cst_13 [1] : vector<16x16xf32> to vector<16xf32>
    %53 = vector.shape_cast %52 : vector<16xf32> to vector<16x1xf32>
    %54 = tpu.reciprocal %53 {approx = true} : vector<16x1xf32> -> vector<16x1xf32>
    %55 = vector.broadcast %54 : vector<16x1xf32> to vector<16x16xf32>
    %56 = arith.mulf %51, %55 : vector<16x16xf32>
    %57 = arith.truncf %56 : vector<16x16xf32> to vector<16x16xbf16>
    %58 = vector.extract_strided_slice %6 {offsets = [0, 8], sizes = [16, 8], strides = [1, 1]} : vector<16x16xf32> to vector<16x8xf32>
    %59 = arith.truncf %58 : vector<16x8xf32> to vector<16x8xbf16>
    %cst_14 = arith.constant dense<0.000000e+00> : vector<16x8xf32>
    %60 = tpu.matmul %57, %59, %cst_14 {dimension_numbers = #tpu.dot_dimension_numbers<[1], [0], [0], [1], [0, 0, 1, 1], [], []>} : vector<16x16xbf16>, vector<16x8xbf16>, vector<16x8xf32> -> vector<16x8xf32>
    %61 = tpu.concatenate %34, %60 in 1 : vector<16x8xf32>, vector<16x8xf32> -> vector<16x16xf32>
    %62 = vector.extract_strided_slice %4 {offsets = [16, 0], sizes = [16, 20], strides = [1, 1]} : vector<32x20xf32> to vector<16x20xf32>
    %63 = vector.extract_strided_slice %62 {offsets = [0, 0], sizes = [16, 16], strides = [1, 1]} : vector<16x20xf32> to vector<16x16xf32>
    %64 = vector.extract_strided_slice %62 {offsets = [0, 16], sizes = [16, 2], strides = [1, 1]} : vector<16x20xf32> to vector<16x2xf32>
    %65 = vector.extract_strided_slice %62 {offsets = [0, 18], sizes = [16, 2], strides = [1, 1]} : vector<16x20xf32> to vector<16x2xf32>
    %66 = vector.extract_strided_slice %65 {offsets = [0, 0], sizes = [16, 1], strides = [1, 1]} : vector<16x2xf32> to vector<16x1xf32>
    %67 = vector.extract_strided_slice %64 {offsets = [0, 0], sizes = [16, 1], strides = [1, 1]} : vector<16x2xf32> to vector<16x1xf32>
    %68 = tpu.transpose %67, [1, 0] : vector<16x1xf32> -> vector<1x16xf32>
    %69 = vector.broadcast %66 : vector<16x1xf32> to vector<16x16xf32>
    %70 = vector.broadcast %68 : vector<1x16xf32> to vector<16x16xf32>
    %71 = arith.addf %69, %70 : vector<16x16xf32>
    %cst_15 = arith.constant 0.000000e+00 : f32
    %72 = vector.broadcast %cst_15 : f32 to vector<16x16xf32>
    %73 = arith.cmpf ogt, %71, %72 : vector<16x16xf32>
    %cst_16 = arith.constant 0.00999999977 : f32
    %74 = vector.broadcast %cst_16 : f32 to vector<16x16xf32>
    %75 = arith.mulf %74, %71 : vector<16x16xf32>
    %76 = arith.select %73, %71, %75 : vector<16x16xi1>, vector<16x16xf32>
    %77 = arith.addf %76, %1 : vector<16x16xf32>
    %cst_17 = arith.constant dense<0xFF800000> : vector<16xf32>
    %78 = vector.multi_reduction <maximumf>, %77, %cst_17 [1] : vector<16x16xf32> to vector<16xf32>
    %79 = vector.shape_cast %78 : vector<16xf32> to vector<16x1xf32>
    %80 = vector.broadcast %79 : vector<16x1xf32> to vector<16x16xf32>
    %81 = arith.subf %77, %80 : vector<16x16xf32>
    %82 = math.exp %81 : vector<16x16xf32>
    %cst_18 = arith.constant dense<0.000000e+00> : vector<16xf32>
    %83 = vector.multi_reduction <add>, %82, %cst_18 [1] : vector<16x16xf32> to vector<16xf32>
    %84 = vector.shape_cast %83 : vector<16xf32> to vector<16x1xf32>
    %85 = tpu.reciprocal %84 {approx = true} : vector<16x1xf32> -> vector<16x1xf32>
    %86 = vector.broadcast %85 : vector<16x1xf32> to vector<16x16xf32>
    %87 = arith.mulf %82, %86 : vector<16x16xf32>
    %88 = arith.truncf %87 : vector<16x16xf32> to vector<16x16xbf16>
    %89 = vector.extract_strided_slice %63 {offsets = [0, 0], sizes = [16, 8], strides = [1, 1]} : vector<16x16xf32> to vector<16x8xf32>
    %90 = arith.truncf %89 : vector<16x8xf32> to vector<16x8xbf16>
    %cst_19 = arith.constant dense<0.000000e+00> : vector<16x8xf32>
    %91 = tpu.matmul %88, %90, %cst_19 {dimension_numbers = #tpu.dot_dimension_numbers<[1], [0], [0], [1], [0, 0, 1, 1], [], []>} : vector<16x16xbf16>, vector<16x8xbf16>, vector<16x8xf32> -> vector<16x8xf32>
    %92 = vector.extract_strided_slice %65 {offsets = [0, 1], sizes = [16, 1], strides = [1, 1]} : vector<16x2xf32> to vector<16x1xf32>
    %93 = vector.extract_strided_slice %64 {offsets = [0, 1], sizes = [16, 1], strides = [1, 1]} : vector<16x2xf32> to vector<16x1xf32>
    %94 = tpu.transpose %93, [1, 0] : vector<16x1xf32> -> vector<1x16xf32>
    %95 = vector.broadcast %92 : vector<16x1xf32> to vector<16x16xf32>
    %96 = vector.broadcast %94 : vector<1x16xf32> to vector<16x16xf32>
    %97 = arith.addf %95, %96 : vector<16x16xf32>
    %cst_20 = arith.constant 0.000000e+00 : f32
    %98 = vector.broadcast %cst_20 : f32 to vector<16x16xf32>
    %99 = arith.cmpf ogt, %97, %98 : vector<16x16xf32>
    %cst_21 = arith.constant 0.00999999977 : f32
    %100 = vector.broadcast %cst_21 : f32 to vector<16x16xf32>
    %101 = arith.mulf %100, %97 : vector<16x16xf32>
    %102 = arith.select %99, %97, %101 : vector<16x16xi1>, vector<16x16xf32>
    %103 = arith.addf %102, %1 : vector<16x16xf32>
    %cst_22 = arith.constant dense<0xFF800000> : vector<16xf32>
    %104 = vector.multi_reduction <maximumf>, %103, %cst_22 [1] : vector<16x16xf32> to vector<16xf32>
    %105 = vector.shape_cast %104 : vector<16xf32> to vector<16x1xf32>
    %106 = vector.broadcast %105 : vector<16x1xf32> to vector<16x16xf32>
    %107 = arith.subf %103, %106 : vector<16x16xf32>
    %108 = math.exp %107 : vector<16x16xf32>
    %cst_23 = arith.constant dense<0.000000e+00> : vector<16xf32>
    %109 = vector.multi_reduction <add>, %108, %cst_23 [1] : vector<16x16xf32> to vector<16xf32>
    %110 = vector.shape_cast %109 : vector<16xf32> to vector<16x1xf32>
    %111 = tpu.reciprocal %110 {approx = true} : vector<16x1xf32> -> vector<16x1xf32>
    %112 = vector.broadcast %111 : vector<16x1xf32> to vector<16x16xf32>
    %113 = arith.mulf %108, %112 : vector<16x16xf32>
    %114 = arith.truncf %113 : vector<16x16xf32> to vector<16x16xbf16>
    %115 = vector.extract_strided_slice %63 {offsets = [0, 8], sizes = [16, 8], strides = [1, 1]} : vector<16x16xf32> to vector<16x8xf32>
    %116 = arith.truncf %115 : vector<16x8xf32> to vector<16x8xbf16>
    %cst_24 = arith.constant dense<0.000000e+00> : vector<16x8xf32>
    %117 = tpu.matmul %114, %116, %cst_24 {dimension_numbers = #tpu.dot_dimension_numbers<[1], [0], [0], [1], [0, 0, 1, 1], [], []>} : vector<16x16xbf16>, vector<16x8xbf16>, vector<16x8xf32> -> vector<16x8xf32>
    %118 = tpu.concatenate %91, %117 in 1 : vector<16x8xf32>, vector<16x8xf32> -> vector<16x16xf32>
    %119 = tpu.concatenate %61, %118 in 0 : vector<16x16xf32>, vector<16x16xf32> -> vector<32x16xf32>
    %cst_25 = arith.constant 0.000000e+00 : f32
    %120 = vector.broadcast %cst_25 : f32 to vector<32x16xf32>
    %121 = arith.cmpf ogt, %119, %120 : vector<32x16xf32>
    %cst_26 = arith.constant 0.000000e+00 : f32
    %122 = vector.broadcast %cst_26 : f32 to vector<32x16xf32>
    %123 = arith.minimumf %119, %122 : vector<32x16xf32>
    %124 = math.exp %123 : vector<32x16xf32>
    %cst_27 = arith.constant 1.000000e+00 : f32
    %125 = vector.broadcast %cst_27 : f32 to vector<32x16xf32>
    %126 = arith.subf %124, %125 : vector<32x16xf32>
    %127 = arith.select %121, %119, %126 : vector<32x16xi1>, vector<32x16xf32>
    %c0_28 = arith.constant 0 : index
    %c0_29 = arith.constant 0 : index
    %128 = vector.load %arg4[%c0_28, %c0_29] : memref<16x18xf32, #tpu.memory_space<vmem>>, vector<16x18xf32>
    %cst_30 = arith.constant dense<0.000000e+00> : vector<32x18xf32>
    %129 = tpu.matmul %127, %128, %cst_30 {dimension_numbers = #tpu.dot_dimension_numbers<[1], [0], [0], [1], [0, 0, 1, 1], [], []>} : vector<32x16xf32>, vector<16x18xf32>, vector<32x18xf32> -> vector<32x18xf32>
    %130 = vector.extract_strided_slice %129 {offsets = [0, 0], sizes = [16, 18], strides = [1, 1]} : vector<32x18xf32> to vector<16x18xf32>
    %131 = vector.extract_strided_slice %130 {offsets = [0, 0], sizes = [16, 16], strides = [1, 1]} : vector<16x18xf32> to vector<16x16xf32>
    %132 = vector.extract_strided_slice %130 {offsets = [0, 16], sizes = [16, 1], strides = [1, 1]} : vector<16x18xf32> to vector<16x1xf32>
    %133 = vector.extract_strided_slice %130 {offsets = [0, 17], sizes = [16, 1], strides = [1, 1]} : vector<16x18xf32> to vector<16x1xf32>
    %134 = tpu.transpose %132, [1, 0] : vector<16x1xf32> -> vector<1x16xf32>
    %135 = vector.broadcast %133 : vector<16x1xf32> to vector<16x16xf32>
    %136 = vector.broadcast %134 : vector<1x16xf32> to vector<16x16xf32>
    %137 = arith.addf %135, %136 : vector<16x16xf32>
    %cst_31 = arith.constant 0.000000e+00 : f32
    %138 = vector.broadcast %cst_31 : f32 to vector<16x16xf32>
    %139 = arith.cmpf ogt, %137, %138 : vector<16x16xf32>
    %cst_32 = arith.constant 0.00999999977 : f32
    %140 = vector.broadcast %cst_32 : f32 to vector<16x16xf32>
    %141 = arith.mulf %140, %137 : vector<16x16xf32>
    %142 = arith.select %139, %137, %141 : vector<16x16xi1>, vector<16x16xf32>
    %143 = arith.addf %142, %1 : vector<16x16xf32>
    %cst_33 = arith.constant dense<0xFF800000> : vector<16xf32>
    %144 = vector.multi_reduction <maximumf>, %143, %cst_33 [1] : vector<16x16xf32> to vector<16xf32>
    %145 = vector.shape_cast %144 : vector<16xf32> to vector<16x1xf32>
    %146 = vector.broadcast %145 : vector<16x1xf32> to vector<16x16xf32>
    %147 = arith.subf %143, %146 : vector<16x16xf32>
    %148 = math.exp %147 : vector<16x16xf32>
    %cst_34 = arith.constant dense<0.000000e+00> : vector<16xf32>
    %149 = vector.multi_reduction <add>, %148, %cst_34 [1] : vector<16x16xf32> to vector<16xf32>
    %150 = vector.shape_cast %149 : vector<16xf32> to vector<16x1xf32>
    %151 = tpu.reciprocal %150 {approx = true} : vector<16x1xf32> -> vector<16x1xf32>
    %152 = vector.broadcast %151 : vector<16x1xf32> to vector<16x16xf32>
    %153 = arith.mulf %148, %152 : vector<16x16xf32>
    %154 = arith.truncf %153 : vector<16x16xf32> to vector<16x16xbf16>
    %155 = arith.truncf %131 : vector<16x16xf32> to vector<16x16xbf16>
    %cst_35 = arith.constant dense<0.000000e+00> : vector<16x16xf32>
    %156 = tpu.matmul %154, %155, %cst_35 {dimension_numbers = #tpu.dot_dimension_numbers<[1], [0], [0], [1], [0, 0, 1, 1], [], []>} : vector<16x16xbf16>, vector<16x16xbf16>, vector<16x16xf32> -> vector<16x16xf32>
    %157 = vector.extract_strided_slice %129 {offsets = [16, 0], sizes = [16, 18], strides = [1, 1]} : vector<32x18xf32> to vector<16x18xf32>
    %158 = vector.extract_strided_slice %157 {offsets = [0, 0], sizes = [16, 16], strides = [1, 1]} : vector<16x18xf32> to vector<16x16xf32>
    %159 = vector.extract_strided_slice %157 {offsets = [0, 16], sizes = [16, 1], strides = [1, 1]} : vector<16x18xf32> to vector<16x1xf32>
    %160 = vector.extract_strided_slice %157 {offsets = [0, 17], sizes = [16, 1], strides = [1, 1]} : vector<16x18xf32> to vector<16x1xf32>
    %161 = tpu.transpose %159, [1, 0] : vector<16x1xf32> -> vector<1x16xf32>
    %162 = vector.broadcast %160 : vector<16x1xf32> to vector<16x16xf32>
    %163 = vector.broadcast %161 : vector<1x16xf32> to vector<16x16xf32>
    %164 = arith.addf %162, %163 : vector<16x16xf32>
    %cst_36 = arith.constant 0.000000e+00 : f32
    %165 = vector.broadcast %cst_36 : f32 to vector<16x16xf32>
    %166 = arith.cmpf ogt, %164, %165 : vector<16x16xf32>
    %cst_37 = arith.constant 0.00999999977 : f32
    %167 = vector.broadcast %cst_37 : f32 to vector<16x16xf32>
    %168 = arith.mulf %167, %164 : vector<16x16xf32>
    %169 = arith.select %166, %164, %168 : vector<16x16xi1>, vector<16x16xf32>
    %170 = arith.addf %169, %1 : vector<16x16xf32>
    %cst_38 = arith.constant dense<0xFF800000> : vector<16xf32>
    %171 = vector.multi_reduction <maximumf>, %170, %cst_38 [1] : vector<16x16xf32> to vector<16xf32>
    %172 = vector.shape_cast %171 : vector<16xf32> to vector<16x1xf32>
    %173 = vector.broadcast %172 : vector<16x1xf32> to vector<16x16xf32>
    %174 = arith.subf %170, %173 : vector<16x16xf32>
    %175 = math.exp %174 : vector<16x16xf32>
    %cst_39 = arith.constant dense<0.000000e+00> : vector<16xf32>
    %176 = vector.multi_reduction <add>, %175, %cst_39 [1] : vector<16x16xf32> to vector<16xf32>
    %177 = vector.shape_cast %176 : vector<16xf32> to vector<16x1xf32>
    %178 = tpu.reciprocal %177 {approx = true} : vector<16x1xf32> -> vector<16x1xf32>
    %179 = vector.broadcast %178 : vector<16x1xf32> to vector<16x16xf32>
    %180 = arith.mulf %175, %179 : vector<16x16xf32>
    %181 = arith.truncf %180 : vector<16x16xf32> to vector<16x16xbf16>
    %182 = arith.truncf %158 : vector<16x16xf32> to vector<16x16xbf16>
    %cst_40 = arith.constant dense<0.000000e+00> : vector<16x16xf32>
    %183 = tpu.matmul %181, %182, %cst_40 {dimension_numbers = #tpu.dot_dimension_numbers<[1], [0], [0], [1], [0, 0, 1, 1], [], []>} : vector<16x16xbf16>, vector<16x16xbf16>, vector<16x16xf32> -> vector<16x16xf32>
    %184 = tpu.concatenate %156, %183 in 0 : vector<16x16xf32>, vector<16x16xf32> -> vector<32x16xf32>
    %185 = vector.extract_strided_slice %184 {offsets = [0, 0], sizes = [16, 16], strides = [1, 1]} : vector<32x16xf32> to vector<16x16xf32>
    %c0_41 = arith.constant 0 : index
    %c0_42 = arith.constant 0 : index
    %186 = vector.load %arg7[%c0_41, %c0_42] : memref<16x16xf32, #tpu.memory_space<vmem>>, vector<16x16xf32>
    tpu.vector_store %arg7[%c0_41, %c0_42], %185 {strides = array<i32>} : memref<16x16xf32, #tpu.memory_space<vmem>>, vector<16x16xf32>,
    %cst_43 = arith.constant dense<0.000000e+00> : vector<16xf32>
    %187 = vector.multi_reduction <add>, %185, %cst_43 [0] : vector<16x16xf32> to vector<16xf32>
    %188 = vector.shape_cast %187 : vector<16xf32> to vector<1x16xf32>
    %cst_44 = arith.constant 1.600000e+01 : f32
    %189 = vector.broadcast %cst_44 : f32 to vector<1x16xf32>
    %190 = arith.divf %188, %189 : vector<1x16xf32>
    %191 = arith.negf %190 : vector<1x16xf32>
    %192 = math.exp %191 : vector<1x16xf32>
    %cst_45 = arith.constant 1.000000e+00 : f32
    %193 = vector.broadcast %cst_45 : f32 to vector<1x16xf32>
    %194 = arith.addf %193, %192 : vector<1x16xf32>
    %195 = arith.divf %193, %194 : vector<1x16xf32>
    %c0_46 = arith.constant 0 : index
    %c0_47 = arith.constant 0 : index
    %196 = vector.load %arg5[%c0_46, %c0_47] : memref<16x16xf32, #tpu.memory_space<vmem>>, vector<16x16xf32>
    %197 = tpu.transpose %195, [1, 0] : vector<1x16xf32> -> vector<16x1xf32>
    %cst_48 = arith.constant dense<0.000000e+00> : vector<16x1xf32>
    %198 = tpu.matmul %196, %197, %cst_48 {dimension_numbers = #tpu.dot_dimension_numbers<[1], [0], [0], [1], [0, 0, 1, 1], [], []>} : vector<16x16xf32>, vector<16x1xf32>, vector<16x1xf32> -> vector<16x1xf32>
    %cst_49 = arith.constant dense<0.000000e+00> : vector<32x1xf32>
    %199 = tpu.matmul %184, %198, %cst_49 {dimension_numbers = #tpu.dot_dimension_numbers<[1], [0], [0], [1], [0, 0, 1, 1], [], []>} : vector<32x16xf32>, vector<16x1xf32>, vector<32x1xf32> -> vector<32x1xf32>
    %c0_50 = arith.constant 0 : index
    %c0_51 = arith.constant 0 : index
    %200 = vector.load %arg6[%c0_50, %c0_51] : memref<1x1xf32, #tpu.memory_space<vmem>>, vector<1x1xf32>
    %201 = vector.broadcast %200 : vector<1x1xf32> to vector<32x1xf32>
    %202 = arith.addf %199, %201 : vector<32x1xf32>
    %c0_52 = arith.constant 0 : index
    %c0_53 = arith.constant 0 : index
    %203 = vector.load %arg8[%c0_52, %c0_53] : memref<32x1xf32, #tpu.memory_space<vmem>>, vector<32x1xf32>
    tpu.vector_store %arg8[%c0_52, %c0_53], %202 {strides = array<i32>} : memref<32x1xf32, #tpu.memory_space<vmem>>, vector<32x1xf32>,
    return
  }
  func.func @transform_0(%arg0: i32) -> (i32, i32) {
    %c0_i32 = arith.constant 0 : i32
    %c0_i32_0 = arith.constant 0 : i32
    %c0_i32_1 = arith.constant 0 : i32
    return %c0_i32, %c0_i32_0 : i32, i32
  }
  func.func @transform_1(%arg0: i32) -> (i32, i32) {
    %c0_i32 = arith.constant 0 : i32
    %c0_i32_0 = arith.constant 0 : i32
    %c0_i32_1 = arith.constant 0 : i32
    return %c0_i32, %c0_i32_0 : i32, i32
  }
  func.func @transform_2(%arg0: i32) -> (i32, i32) {
    %c0_i32 = arith.constant 0 : i32
    %c0_i32_0 = arith.constant 0 : i32
    %c0_i32_1 = arith.constant 0 : i32
    return %c0_i32, %c0_i32_0 : i32, i32
  }
  func.func @transform_3(%arg0: i32) -> (i32, i32) {
    %c0_i32 = arith.constant 0 : i32
    %c0_i32_0 = arith.constant 0 : i32
    %c0_i32_1 = arith.constant 0 : i32
    return %c0_i32, %c0_i32_0 : i32, i32
  }
  func.func @transform_4(%arg0: i32) -> (i32, i32) {
    %c0_i32 = arith.constant 0 : i32
    %c0_i32_0 = arith.constant 0 : i32
    %c0_i32_1 = arith.constant 0 : i32
    return %c0_i32, %c0_i32_0 : i32, i32
  }
  func.func @transform_5(%arg0: i32) -> (i32, i32) {
    %c0_i32 = arith.constant 0 : i32
    %c0_i32_0 = arith.constant 0 : i32
    %c0_i32_1 = arith.constant 0 : i32
    return %c0_i32, %c0_i32_0 : i32, i32
  }
  func.func @transform_6(%arg0: i32) -> (i32, i32) {
    %c0_i32 = arith.constant 0 : i32
    %c0_i32_0 = arith.constant 0 : i32
    %c0_i32_1 = arith.constant 0 : i32
    return %c0_i32, %c0_i32_0 : i32, i32
  }
  func.func @transform_7(%arg0: i32) -> (i32, i32) {
    %c0_i32 = arith.constant 0 : i32
    %c0_i32_0 = arith.constant 0 : i32
    %c0_i32_1 = arith.constant 0 : i32
    return %c0_i32, %c0_i32_0 : i32, i32
  }
}

</mosaic_0001>

<bundles_post_ra>
// kernel: tpu_custom_call.1
= control target key start
LH: loop header
LB: loop body
LE: loop exit
PB: predicated region body
PF: predicated region fallthrough
CT: control target
= control target key end

     0   :  { %s1747_s0 = inlined_call_operand.vmem [shape: f32[32,32], index: 0, kind: input, shape index: {}]   ;;  %s1748_s1 = inlined_call_operand.hbm [shape: bf16[16,16], index: 1, kind: input, shape index: {}]   ;;  %s1749_s2 = inlined_call_operand.vmem [shape: f32[32,20], index: 2, kind: input, shape index: {}]   ;;  %s1750_s3 = inlined_call_operand.vmem [shape: f32[16,18], index: 3, kind: input, shape index: {}]   ;;  %s1751_s4 = inlined_call_operand.vmem [shape: f32[16,16], index: 4, kind: input, shape index: {}]   ;;  %s1752_s5 = inlined_call_operand.<no memory space> [shape: f32[1,1], index: 5, kind: input, shape index: {}]   ;;  %s1753_s6 = inlined_call_operand.hbm [shape: f32[16,16], index: 6, kind: output, shape index: {0}]   ;;  %s1754_s7 = inlined_call_operand.vmem [shape: f32[32,1], index: 7, kind: output, shape index: {1}]  }
   0x1   :  { %v13_v0 = vstv %s1752_s5 }
   0x2   :  { %14 = vst [vmem:[#allocation2] sm:$0x1] %v13_v0 }
   0x3   :  { %15 = vsyncpa [#allocation4], 0 }
   0x4   :  { %16 = vsyncpa [#allocation5], 0  ;;  %s1494_s26 = smov [#allocation3]  }
   0x5   :  { %s24_s27 = sshll.u32 %s1494_s26, 4  ;;  %s25_s27 = int_to_ptr.vmem [resolvable:$true] %s24_s27 }
   0x6   :  { %s1458_s28 = scalar_lea.vmem %s25_s27, 128  ;;  %p1463_p1 = scmp.lt.s32.totalorder %s25_s27, %s25_s27 }
   0x7   :  { %p1459_p0 = scmp.ne.s32.totalorder %s25_s27, %s1458_s28  ;;  %p1464_p2 = scmp.lt.s32.totalorder %s1458_s28, %s1458_s28 }
   0x9   :  { %p1465_p3 = por %p1464_p2, %p1463_p1 }
   0xb   :  { %p1466_p4 = pnand %p1465_p3, %p1459_p0 }
   0xd   :  { %1469 = shalt.err (!%p1466_p4)
}
   0xe   :  { %s1495_s29 = smov 64   ;;  %s1496_s30 = smov 4  }
   0xf   :  { %30 = dma.hbm_to_vmem [thread:$0]  %s1748_s1, 128, %s25_s27, [#allocation4], %s1495_s29, %s1495_s29, %s1496_s30  }
  0x10   :  { %1490 = dma.done.wait [#allocation4], 128  }
  0x11   :  { %1491 = vsyncadd [#allocation4], 4294967168  ;;  %vm55_vm0 = vcmask 261120   ;;  %v54_v1 = vld [vmem:[%s1749_s2 + $0x18] sm:$0xff]  ;;  %v53_v2 = vld [vmem:[%s1749_s2 + $0x10] sm:$0xff]  ;;  %v1497_v7 = vmov 0.0   ;;  %v201_v22 = vlaneseq }
  0x12   :  { %1299 = vmatprep.subr.mxu0 %v54_v1  ;;  %v47_v3 = vld [vmem:[%s1747_s0] sm:$0xff]  ;;  %v52_v4 = vld [vmem:[%s1749_s2 + $0x8] sm:$0xff]  ;;  %1313 = vmatprep.subr.bf16.mxu1 %v1497_v7  ;;  %v1498_v8 = vmov 19   ;;  %v1499_v9 = vmov 18   ;;  %v49_v10 = vld [vmem:[%s1747_s0 + $0x10] sm:$0xff]  ;;  %s1500_s23 = smov 111  }
  0x13   :  { %1300 = vmatpush3.msra.mxu0 %v54_v1  ;;  %1307 = vmatprep.mubr.msk.f32.mxu0 %vm55_vm0, %v47_v3  ;;  %v51_v5 = vld [vmem:[%s1749_s2] sm:$0xff]  ;;  %v48_v6 = vld [vmem:[%s1747_s0 + $0x8] sm:$0xff]  ;;  %v50_v11 = vld [vmem:[%s1747_s0 + $0x18] sm:$0xff]  ;;  %s1501_s24 = smov 112   ;;  %v202_v25 = vshrl.u32 %v201_v22, 7  ;;  %vm215_vm4 = vcmask 130048  }
  0x14   :  { %1301 = vmatprep.subr.mxu0 %v53_v2  ;;  %1384 = vset.pattern.permute.xlu0 %v1498_v8  ;;  %v1264_v33 = vld [vmem:[#allocation3] sm:$0xff]   ;;  %s1502_s0 = smov 120   ;;  %vm1503_vm6 = vmmov 0   ;;  %s1504_s25 = smov 8   ;;  %vm423_vm11 = vcmask 64512  }
  0x15   :  { %1302 = vmatpush3.msra.mxu0 %v53_v2  ;;  %1383 = vset.pattern.permute.xlu1 %v1499_v9  ;;  %v1603_v28 = vsub.s32 0, %v202_v25  ;;  %v1607_v37 = vunpack.c.h.bf16 %v1264_v33  ;;  %v1609_v38 = vunpack.c.l.bf16 %v1264_v33 }
  0x16   :  { %1303 = vmatprep.subr.mxu0 %v52_v4  ;;  %1315 = vmatprep.mubr.msk.bf16.mxu1 %vm1503_vm6, %v1497_v7 }
  0x17   :  { %1304 = vmatpush3.msra.mxu0 %v52_v4 }
  0x18   :  { %1305 = vmatprep.subr.mxu0 %v51_v5 }
  0x19   :  { %1306 = vmatpush3.msra.mxu0 %v51_v5 }
  0x1a   :  { %1308 = vmatmul.mubr.msk.f32.vlgmr.msra.gmra.mxu0 %vm55_vm0, %v48_v6  ;;  %1325 = vmatprep.subr.bf16.mxu0 %v1497_v7 }
  0x1b   :  { %1310 = vmatprep.mubr.msk.f32.mxu0 %vm55_vm0, %v49_v10 }
  0x1e   :  { %1311 = vmatmul.mubr.msk.f32.gmra.mxu0 %vm55_vm0, %v50_v11 }
  0x1f   :  { %1327 = vmatprep.mubr.msk.bf16.mxu0 %vm1503_vm6, %v1497_v7 }
  0xda   :  { %v1309_v12 = vpop.f32.mrf.mxu0 }
  0xdb   :  { %286 = vrot.lane.b32.xlu1 %v1309_v12, %s1500_s23  ;;  %157 = vrot.lane.b32.xlu0 %v1309_v12, %s1501_s24 }
  0xdc   :  { %v134_v13 = vpop.f32.mrf.mxu0 }
  0xdd   :  { %v1587_v14 = vpack.c.bf16 %v1309_v12, %v134_v13 }
  0xde   :  { %v1594_v19 = vpop.f32.mrf.mxu0 }
  0xdf   :  { %284 = vrot.lane.b32.xlu1 %v134_v13, %s1500_s23  ;;  %155 = vrot.lane.b32.xlu0 %v134_v13, %s1501_s24 }
  0xe0   :  { %1314 = vmatpush3.bf16.msra.mxu1 %v1587_v14  ;;  %v1596_v20 = vpop.f32.mrf.mxu0 }
  0xe1   :  { %1319 = vmatprep.subr.bf16.mxu1 %v1497_v7  ;;  %v1600_v21 = vpack.c.bf16 %v1594_v19, %v1596_v20 }
  0xe3   :  { %198 = vperm.xlu1 %1383, %v1309_v12   ;;  %327 = vperm.xlu0 %1384, %v1309_v12  }
  0xe4   :  { %1326 = vmatpush3.bf16.msra.mxu0 %v1600_v21 }
  0xe7   :  { %1386 = vset.pattern.permute.xlu1 %v1498_v8  ;;  %1385 = vset.pattern.permute.xlu0 %v1499_v9 }
  0xe8   :  { %323 = vperm.xlu1 %1386, %v134_v13   ;;  %194 = vperm.xlu0 %1385, %v134_v13  }
 0x14d   :  { %v287_v15 = vpop.permute.xlu1 %286  ;;  %v158_v16 = vpop.permute.xlu0 %157 }
 0x151   :  { %v285_v17 = vpop.permute.xlu1 %284  ;;  %v156_v18 = vpop.permute.xlu0 %155 }
 0x152   :  { %290 = vxpose.xlu0.b32.start [1/2] (short) (narrow) %v285_v17, 8  ;;  %161 = vxpose.xlu1.b32.start [1/2] (short) (narrow) %v156_v18, 8 }
 0x156   :  { %291 = vxpose.xlu0.b32.end [2/2] (short) (narrow) %v287_v15, 8  ;;  %162 = vxpose.xlu1.b32.end [2/2] (short) (narrow) %v158_v16, 8 }
 0x15e   :  { %v199_v23 = vpop.permute.xlu1 %198  ;;  %v328_v24 = vpop.permute.xlu0 %327 }
 0x163   :  { %v324_v26 = vpop.permute.xlu1 %323  ;;  %v195_v27 = vpop.permute.xlu0 %194 }
 0x1ce   :  { %v177_v29 = vpop.trf.xlu1  ;;  %v306_v30 = vpop.trf.xlu0 }
 0x1cf   :  { %v204_v31 = vrot.slane %v177_v29, %v1603_v28  ;;  %v333_v32 = vrot.slane %v306_v30, %v1603_v28 }
 0x1d1   :  { %v205_v34 = vadd.f32 %v204_v31, %v195_v27  ;;  %v206_v35 = vadd.f32 %v204_v31, %v199_v23  ;;  %v334_v36 = vadd.f32 %v333_v32, %v324_v26  ;;  %v335_v51 = vadd.f32 %v333_v32, %v328_v24 }
 0x1d3   :  { %v209_v39 = vmul.f32 0.01, %v205_v34  ;;  %v210_v40 = vmul.f32 0.01, %v206_v35  ;;  %v338_v41 = vmul.f32 0.01, %v334_v36 }
 0x1d4   :  { %vm208_vm1 = vcmp.gt.f32.partialorder %v206_v35, 0.0  ;;  %vm207_vm2 = vcmp.gt.f32.partialorder %v205_v34, 0.0  ;;  %vm336_vm3 = vcmp.gt.f32.partialorder %v334_v36, 0.0  ;;  %v339_v52 = vmul.f32 0.01, %v335_v51 }
 0x1d5   :  { %v212_v42 = vsel %vm208_vm1, %v206_v35, %v210_v40  ;;  %v211_v43 = vsel %vm207_vm2, %v205_v34, %v209_v39  ;;  %v340_v44 = vsel %vm336_vm3, %v334_v36, %v338_v41  ;;  %vm337_vm5 = vcmp.gt.f32.partialorder %v335_v51, 0.0 }
 0x1d6   :  { %v214_v45 = vadd.f32 %v1607_v37, %v212_v42  ;;  %v213_v46 = vadd.f32 %v1609_v38, %v211_v43  ;;  %v342_v49 = vadd.f32 %v1609_v38, %v340_v44  ;;  %v341_v53 = vsel %vm337_vm5, %v335_v51, %v339_v52 }
 0x1d7   :  { %v343_v54 = vadd.f32 %v1607_v37, %v341_v53 }
 0x1d8   :  { %v219_v47 = vsel %vm215_vm4, %v214_v45, -inf  ;;  %v216_v48 = vsel %vm215_vm4, %v213_v46, -inf  ;;  %v344_v50 = vsel %vm215_vm4, %v342_v49, -inf }
 0x1d9   :  { %220 = vmax.xlane.f32.xlu1 %v219_v47  ;;  %217 = vmax.xlane.f32.xlu0 %v216_v48  ;;  %v347_v55 = vsel %vm215_vm4, %v343_v54, -inf }
 0x1dd   :  { %345 = vmax.xlane.f32.xlu1 %v344_v50 }
 0x1ee   :  { %556 = vrot.lane.b32.xlu1 %v1596_v20, %s1500_s23 }
 0x1ef   :  { %558 = vrot.lane.b32.xlu0 %v1594_v19, %s1500_s23 }
 0x1f2   :  { %595 = vperm.xlu1 %1386, %v1596_v20  }
 0x1f6   :  { %599 = vperm.xlu1 %1386, %v1594_v19  }
 0x1fa   :  { %430 = vrot.lane.b32.xlu1 %v1594_v19, %s1501_s24 }
 0x1fb   :  { %1387 = vset.pattern.permute.xlu1 %v1499_v9 }
 0x20e   :  { %348 = vmax.xlane.f32.xlu0 %v347_v55 }
 0x262   :  { %v221_v56 = vpop.xlane.xlu1 %220  ;;  %v218_v62 = vpop.xlane.xlu0 %217 }
 0x263   :  { %v223_v57 = vsub.f32 %v214_v45, %v221_v56  ;;  %v222_v5 = vsub.f32 %v213_v46, %v218_v62 }
 0x265   :  { %v226_v58 = vmul.f32 1.442695, %v223_v57  ;;  %v224_v6 = vmul.f32 1.442695, %v222_v5 }
 0x266   :  { %v346_v59 = vpop.xlane.xlu1 %345  ;;  %v559_v0 = vpop.permute.xlu0 %558 }
 0x267   :  { %1390 = vpow2.f32 %v226_v58  ;;  %v350_v60 = vsub.f32 %v342_v49, %v346_v59 }
 0x269   :  { %v352_v61 = vmul.f32 1.442695, %v350_v60 }
 0x26a   :  { %v557_v63 = vpop.permute.xlu1 %556 }
 0x26b   :  { %1392 = vpow2.f32 %v352_v61  ;;  %562 = vxpose.xlu0.b32.start [1/2] (short) (narrow) %v557_v63, 8 }
 0x26c   :  { %1394 = vpow2.f32 %v224_v6 }
 0x26e   :  { %v596_v15 = vpop.permute.xlu1 %595 }
 0x26f   :  { %563 = vxpose.xlu0.b32.end [2/2] (short) (narrow) %v559_v0, 8 }
 0x272   :  { %v600_v18 = vpop.permute.xlu1 %599 }
 0x274   :  { %v1391_v1 = vpop.eup %1390 }
 0x275   :  { %v231_v2 = vsel %vm215_vm4, %v1391_v1, 0.0 }
 0x276   :  { %232 = vadd.xlane.f32.xlu1 %v231_v2  ;;  %v431_v31 = vpop.permute.xlu1 %430 }
 0x278   :  { %v1629_v3 = vpop.eup %1392 }
 0x279   :  { %v356_v4 = vsel %vm215_vm4, %v1629_v3, 0.0  ;;  %v1395_v8 = vpop.eup %1394 }
 0x27a   :  { %357 = vadd.xlane.f32.xlu1 %v356_v4  ;;  %v228_v9 = vsel %vm215_vm4, %v1395_v8, 0.0 }
 0x28b   :  { %368 = vrot.lane.b32.xlu1 %v1587_v14, %s1502_s0 }
 0x28f   :  { %467 = vperm.xlu1 %1387, %v1596_v20  }
 0x293   :  { %471 = vperm.xlu1 %1387, %v1594_v19  }
 0x297   :  { %v349_v10 = vpop.xlane.xlu0 %348 }
 0x298   :  { %v351_v11 = vsub.f32 %v343_v54, %v349_v10 }
 0x29a   :  { %v354_v12 = vmul.f32 1.442695, %v351_v11 }
 0x29c   :  { %229 = vadd.xlane.f32.xlu0 %v228_v9  ;;  %1396 = vpow2.f32 %v354_v12 }
 0x2a9   :  { %v1397_v13 = vpop.eup %1396 }
 0x2aa   :  { %v359_v14 = vsel %vm215_vm4, %v1397_v13, 0.0 }
 0x2b2   :  { %428 = vrot.lane.b32.xlu0 %v1596_v20, %s1501_s24 }
 0x2d1   :  { %360 = vadd.xlane.f32.xlu0 %v359_v14 }
 0x2e7   :  { %v578_v16 = vpop.trf.xlu0 }
 0x2e8   :  { %v605_v17 = vrot.slane %v578_v16, %v1603_v28 }
 0x2ea   :  { %v606_v19 = vadd.f32 %v605_v17, %v596_v15  ;;  %v607_v22 = vadd.f32 %v605_v17, %v600_v18 }
 0x2ec   :  { %v610_v23 = vmul.f32 0.01, %v606_v19  ;;  %v611_v24 = vmul.f32 0.01, %v607_v22  ;;  %vm609_vm7 = vcmp.gt.f32.partialorder %v607_v22, 0.0  ;;  %vm608_vm8 = vcmp.gt.f32.partialorder %v606_v19, 0.0 }
 0x2ee   :  { %v613_v20 = vsel %vm609_vm7, %v607_v22, %v611_v24  ;;  %v612_v25 = vsel %vm608_vm8, %v606_v19, %v610_v23 }
 0x2ef   :  { %v615_v26 = vadd.f32 %v1607_v37, %v613_v20  ;;  %v614_v27 = vadd.f32 %v1609_v38, %v612_v25 }
 0x2f1   :  { %v619_v29 = vsel %vm215_vm4, %v615_v26, -inf  ;;  %v616_v30 = vsel %vm215_vm4, %v614_v27, -inf }
 0x2f2   :  { %620 = vmax.xlane.f32.xlu0 %v619_v29  ;;  %617 = vmax.xlane.f32.xlu1 %v616_v30 }
 0x2ff   :  { %v233_v32 = vpop.xlane.xlu1 %232 }
 0x300   :  { %1398 = vrcp.f32 %v233_v32 }
 0x303   :  { %v358_v36 = vpop.xlane.xlu1 %357 }
 0x307   :  { %v369_v43 = vpop.permute.xlu1 %368 }
 0x30b   :  { %v468_v50 = vpop.permute.xlu1 %467 }
 0x30d   :  { %v1399_v35 = vpop.eup %1398 }
 0x30e   :  { %v237_v41 = vmul.f32 %v1399_v35, %v1391_v1 }
 0x30f   :  { %v472_v51 = vpop.permute.xlu1 %471 }
 0x325   :  { %v230_v33 = vpop.xlane.xlu0 %229 }
 0x326   :  { %1400 = vrcp.f32 %v230_v33 }
 0x327   :  { %1402 = vrcp.f32 %v358_v36 }
 0x329   :  { %v429_v34 = vpop.permute.xlu0 %428 }
 0x32a   :  { %434 = vxpose.xlu0.b32.start [1/2] (short) (narrow) %v429_v34, 8 }
 0x32e   :  { %435 = vxpose.xlu0.b32.end [2/2] (short) (narrow) %v431_v31, 8 }
 0x333   :  { %v1401_v39 = vpop.eup %1400 }
 0x334   :  { %v236_v40 = vmul.f32 %v1401_v39, %v1395_v8  ;;  %v1403_v45 = vpop.eup %1402 }
 0x335   :  { %v364_v47 = vmul.f32 %v1403_v45, %v1629_v3 }
 0x336   :  { %v238_v42 = vpack.c.bf16 %v237_v41, %v236_v40  ;;  %v722_v40 = vld [vmem:[%s1750_s3 + $0x8] sm:$0xff] }
 0x337   :  { %1337 = vmatprep.subr.mxu0 %v722_v40 }
 0x338   :  { %1316 = vmatmul.mubr.msk.bf16.vlgmr.msra.gmra.mxu1 %vm215_vm4, %v238_v42 }
 0x339   :  { %1320 = vmatpush3.bf16.msra.mxu1 %v369_v43  ;;  %1321 = vmatprep.mubr.msk.bf16.mxu1 %vm1503_vm6, %v1497_v7 }
 0x33a   :  { %1331 = vmatprep.subr.bf16.mxu1 %v1497_v7 }
 0x35a   :  { %v361_v44 = vpop.xlane.xlu0 %360 }
 0x35b   :  { %1404 = vrcp.f32 %v361_v44 }
 0x368   :  { %v1405_v46 = vpop.eup %1404 }
 0x369   :  { %v365_v48 = vmul.f32 %v1405_v46, %v1397_v13 }
 0x36b   :  { %v366_v49 = vpack.c.bf16 %v365_v48, %v364_v47 }
 0x36d   :  { %1322 = vmatmul.mubr.msk.bf16.vlgmr.msra.gmra.mxu1 %vm215_vm4, %v366_v49 }
 0x36e   :  { %1333 = vmatprep.mubr.msk.bf16.mxu1 %vm1503_vm6, %v1497_v7 }
 0x37b   :  { %v618_v52 = vpop.xlane.xlu1 %617  ;;  %v621_v54 = vpop.xlane.xlu0 %620 }
 0x37c   :  { %v622_v53 = vsub.f32 %v614_v27, %v618_v52  ;;  %v623_v56 = vsub.f32 %v615_v26, %v621_v54 }
 0x37e   :  { %v624_v55 = vmul.f32 1.442695, %v622_v53  ;;  %v626_v59 = vmul.f32 1.442695, %v623_v56  ;;  %v721_v56 = vld [vmem:[%s1750_s3] sm:$0xff] }
 0x380   :  { %1406 = vpow2.f32 %v624_v55 }
 0x381   :  { %1408 = vpow2.f32 %v626_v59 }
 0x38d   :  { %v1407_v6 = vpop.eup %1406 }
 0x38e   :  { %v628_v8 = vsel %vm215_vm4, %v1407_v6, 0.0  ;;  %v1409_v9 = vpop.eup %1408 }
 0x38f   :  { %v631_v10 = vsel %vm215_vm4, %v1409_v9, 0.0 }
 0x3a6   :  { %v450_v57 = vpop.trf.xlu0 }
 0x3a7   :  { %v477_v58 = vrot.slane %v450_v57, %v1603_v28 }
 0x3a9   :  { %v478_v60 = vadd.f32 %v477_v58, %v468_v50  ;;  %v479_v61 = vadd.f32 %v477_v58, %v472_v51 }
 0x3ab   :  { %v482_v62 = vmul.f32 0.01, %v478_v60  ;;  %v483_v63 = vmul.f32 0.01, %v479_v61  ;;  %vm480_vm9 = vcmp.gt.f32.partialorder %v478_v60, 0.0  ;;  %vm481_vm10 = vcmp.gt.f32.partialorder %v479_v61, 0.0 }
 0x3ad   :  { %v484_v0 = vsel %vm480_vm9, %v478_v60, %v482_v62  ;;  %v485_v1 = vsel %vm481_vm10, %v479_v61, %v483_v63 }
 0x3ae   :  { %v486_v2 = vadd.f32 %v1609_v38, %v484_v0  ;;  %v487_v4 = vadd.f32 %v1607_v37, %v485_v1 }
 0x3b0   :  { %v488_v3 = vsel %vm215_vm4, %v486_v2, -inf  ;;  %v491_v5 = vsel %vm215_vm4, %v487_v4, -inf }
 0x3b1   :  { %489 = vmax.xlane.f32.xlu1 %v488_v3  ;;  %v1505_v3 = vmov 17  }
 0x3b2   :  { %1388 = vset.pattern.permute.xlu0 %v1505_v3  ;;  %1389 = vset.pattern.permute.xlu1 %v1505_v3 }
 0x3b5   :  { %492 = vmax.xlane.f32.xlu1 %v491_v5 }
 0x3b9   :  { %629 = vadd.xlane.f32.xlu1 %v628_v8 }
 0x3bd   :  { %632 = vadd.xlane.f32.xlu1 %v631_v10 }
 0x3ce   :  { %640 = vrot.lane.b32.xlu1 %v1600_v21, %s1502_s0 }
 0x3f8   :  { %v277_v11 = vpop.f32.mrf.mxu1 }
 0x3fa   :  { %v1317_v12 = vpop.f32.mrf.mxu1 }
 0x3fc   :  { %v280_v13 = vpop.f32.mrf.mxu1 }
 0x3fe   :  { %v1318_v14 = vpop.f32.mrf.mxu1 }
 0x42d   :  { %v408_v15 = vpop.f32.mrf.mxu1 }
 0x42f   :  { %v1323_v16 = vpop.f32.mrf.mxu1 }
 0x431   :  { %v411_v17 = vpop.f32.mrf.mxu1 }
 0x433   :  { %v1324_v18 = vpop.f32.mrf.mxu1 }
 0x43a   :  { %v490_v19 = vpop.xlane.xlu1 %489 }
 0x43b   :  { %v494_v22 = vsub.f32 %v486_v2, %v490_v19 }
 0x43d   :  { %v496_v23 = vmul.f32 1.442695, %v494_v22 }
 0x43e   :  { %v493_v24 = vpop.xlane.xlu1 %492 }
 0x43f   :  { %1410 = vpow2.f32 %v496_v23  ;;  %v495_v20 = vsub.f32 %v487_v4, %v493_v24 }
 0x441   :  { %v498_v25 = vmul.f32 1.442695, %v495_v20 }
 0x442   :  { %v630_v26 = vpop.xlane.xlu1 %629 }
 0x443   :  { %1412 = vpow2.f32 %v498_v25 }
 0x444   :  { %1414 = vrcp.f32 %v630_v26 }
 0x446   :  { %v633_v27 = vpop.xlane.xlu1 %632 }
 0x447   :  { %1416 = vrcp.f32 %v633_v27 }
 0x44a   :  { %v641_v21 = vpop.permute.xlu1 %640 }
 0x44b   :  { %1332 = vmatpush3.bf16.msra.mxu1 %v641_v21 }
 0x44c   :  { %v1411_v29 = vpop.eup %1410  ;;  %1347 = vmatprep.subr.bf16.mxu1 %v1497_v7 }
 0x44d   :  { %v500_v30 = vsel %vm215_vm4, %v1411_v29, 0.0 }
 0x44e   :  { %501 = vadd.xlane.f32.xlu1 %v500_v30 }
 0x450   :  { %v1413_v31 = vpop.eup %1412 }
 0x451   :  { %v503_v32 = vsel %vm215_vm4, %v1413_v31, 0.0  ;;  %v1415_v33 = vpop.eup %1414 }
 0x452   :  { %504 = vadd.xlane.f32.xlu0 %v503_v32  ;;  %v636_v35 = vmul.f32 %v1415_v33, %v1407_v6 }
 0x454   :  { %v1417_v34 = vpop.eup %1416 }
 0x455   :  { %v637_v36 = vmul.f32 %v1417_v34, %v1409_v9 }
 0x457   :  { %v638_v39 = vpack.c.bf16 %v637_v36, %v636_v35 }
 0x459   :  { %1334 = vmatmul.mubr.msk.bf16.vlgmr.msra.gmra.mxu1 %vm215_vm4, %v638_v39 }
 0x45a   :  { %1349 = vmatprep.mubr.msk.bf16.mxu1 %vm1503_vm6, %v1497_v7 }
 0x45f   :  { %417 = vrot.lane.b32.xlu1 %v408_v15, %s1504_s25 }
 0x468   :  { %419 = vrot.lane.b32.xlu0 %v411_v17, %s1504_s25 }
 0x4d7   :  { %v502_v41 = vpop.xlane.xlu1 %501 }
 0x4d8   :  { %1418 = vrcp.f32 %v502_v41 }
 0x4db   :  { %v505_v42 = vpop.xlane.xlu0 %504  ;;  %v418_v43 = vpop.permute.xlu1 %417 }
 0x4dc   :  { %1420 = vrcp.f32 %v505_v42  ;;  %v424_v44 = vsel %vm423_vm11, %v277_v11, %v418_v43 }
 0x4dd   :  { %v701_v45 = vmin.f32 %v424_v44, 0.0  ;;  %vm697_vm12 = vcmp.gt.f32.partialorder %v424_v44, 0.0 }
 0x4df   :  { %v705_v46 = vmul.f32 1.442695, %v701_v45  ;;  %v420_v47 = vpop.permute.xlu0 %419 }
 0x4e0   :  { %v425_v48 = vsel %vm423_vm11, %v280_v13, %v420_v47 }
 0x4e1   :  { %1422 = vpow2.f32 %v705_v46  ;;  %v702_v49 = vmin.f32 %v425_v48, 0.0  ;;  %vm698_vm13 = vcmp.gt.f32.partialorder %v425_v48, 0.0 }
 0x4e3   :  { %v707_v50 = vmul.f32 1.442695, %v702_v49 }
 0x4e5   :  { %1424 = vpow2.f32 %v707_v50  ;;  %v1419_v51 = vpop.eup %1418 }
 0x4e6   :  { %v508_v53 = vmul.f32 %v1419_v51, %v1411_v29 }
 0x4e9   :  { %v1421_v52 = vpop.eup %1420 }
 0x4ea   :  { %v509_v54 = vmul.f32 %v1421_v52, %v1413_v31 }
 0x4ec   :  { %v510_v55 = vpack.c.bf16 %v509_v54, %v508_v53 }
 0x4ee   :  { %v1423_v57 = vpop.eup %1422  ;;  %1328 = vmatmul.mubr.msk.bf16.vlgmr.msra.gmra.mxu0 %vm215_vm4, %v510_v55 }
 0x4ef   :  { %v1247_v58 = vadd.f32 -1.0, %v1423_v57  ;;  %1338 = vmatpush3.msra.mxu0 %v722_v40 }
 0x4f0   :  { %1339 = vmatprep.subr.mxu0 %v721_v56 }
 0x4f1   :  { %v717_v59 = vsel %vm697_vm12, %v424_v44, %v1247_v58  ;;  %1340 = vmatpush3.msra.mxu0 %v721_v56 }
 0x4f2   :  { %v1425_v60 = vpop.eup %1424  ;;  %1341 = vmatprep.mubr.msk.f32.mxu0 %vm215_vm4, %v717_v59  ;;  %1353 = vmatprep.subr.bf16.mxu0 %v1497_v7 }
 0x4f3   :  { %v1248_v61 = vadd.f32 -1.0, %v1425_v60 }
 0x4f5   :  { %v718_v62 = vsel %vm698_vm13, %v425_v48, %v1248_v61 }
 0x4f6   :  { %1342 = vmatmul.mubr.msk.f32.vlgmr.msra.gmra.mxu0 %vm215_vm4, %v718_v62 }
 0x519   :  { %v680_v63 = vpop.f32.mrf.mxu1 }
 0x51a   :  { %689 = vrot.lane.b32.xlu1 %v680_v63, %s1504_s25 }
 0x51b   :  { %v1335_v0 = vpop.f32.mrf.mxu1 }
 0x51d   :  { %v683_v1 = vpop.f32.mrf.mxu1 }
 0x51e   :  { %691 = vrot.lane.b32.xlu1 %v683_v1, %s1504_s25 }
 0x51f   :  { %v1336_v2 = vpop.f32.mrf.mxu1 }
 0x58c   :  { %v690_v4 = vpop.permute.xlu1 %689 }
 0x590   :  { %v692_v10 = vpop.permute.xlu1 %691 }
 0x5ae   :  { %v549_v5 = vpop.f32.mrf.mxu0 }
 0x5af   :  { %v695_v6 = vsel %vm423_vm11, %v549_v5, %v690_v4 }
 0x5b0   :  { %v703_v8 = vmin.f32 %v695_v6, 0.0  ;;  %v1329_v9 = vpop.f32.mrf.mxu0  ;;  %vm699_vm14 = vcmp.gt.f32.partialorder %v695_v6, 0.0 }
 0x5b2   :  { %v709_v11 = vmul.f32 1.442695, %v703_v8  ;;  %v552_v12 = vpop.f32.mrf.mxu0 }
 0x5b3   :  { %v696_v13 = vsel %vm423_vm11, %v552_v12, %v692_v10 }
 0x5b4   :  { %1426 = vpow2.f32 %v709_v11  ;;  %v704_v14 = vmin.f32 %v696_v13, 0.0  ;;  %v1330_v15 = vpop.f32.mrf.mxu0  ;;  %vm700_vm15 = vcmp.gt.f32.partialorder %v696_v13, 0.0 }
 0x5b6   :  { %v711_v16 = vmul.f32 1.442695, %v704_v14  ;;  %v1343_v17 = vpop.f32.mrf.mxu0 }
 0x5b8   :  { %1428 = vpow2.f32 %v711_v16  ;;  %v801_v18 = vpop.f32.mrf.mxu0 }
 0x5b9   :  { %v905_v19 = vpack.c.bf16 %v1343_v17, %v801_v18  ;;  %861 = vperm.xlu0 %1388, %v801_v18   ;;  %822 = vrot.lane.b32.xlu1 %v801_v18, %s1501_s24 }
 0x5bb   :  { %1348 = vmatpush3.bf16.msra.mxu1 %v905_v19 }
 0x5bd   :  { %824 = vrot.lane.b32.xlu1 %v1343_v17, %s1501_s24 }
 0x5c1   :  { %v1427_v22 = vpop.eup %1426  ;;  %865 = vperm.xlu1 %1389, %v1343_v17  }
 0x5c2   :  { %v1249_v23 = vadd.f32 -1.0, %v1427_v22 }
 0x5c4   :  { %v719_v24 = vsel %vm699_vm14, %v695_v6, %v1249_v23 }
 0x5c5   :  { %v1429_v20 = vpop.eup %1428  ;;  %1344 = vmatprep.mubr.msk.f32.mxu0 %vm215_vm4, %v719_v24 }
 0x5c6   :  { %v1250_v25 = vadd.f32 -1.0, %v1429_v20 }
 0x5c8   :  { %v720_v26 = vsel %vm700_vm15, %v696_v13, %v1250_v25 }
 0x5c9   :  { %1345 = vmatmul.mubr.msk.f32.gmra.mxu0 %vm215_vm4, %v720_v26 }
 0x5ca   :  { %1355 = vmatprep.mubr.msk.bf16.mxu0 %vm1503_vm6, %v1497_v7 }
 0x62b   :  { %v823_v27 = vpop.permute.xlu1 %822 }
 0x62c   :  { %828 = vxpose.xlu1.b32.start [1/2] (short) (narrow) %v823_v27, 8 }
 0x62f   :  { %v825_v21 = vpop.permute.xlu1 %824 }
 0x630   :  { %829 = vxpose.xlu1.b32.end [2/2] (short) (narrow) %v825_v21, 8 }
 0x634   :  { %v862_v35 = vpop.permute.xlu0 %861 }
 0x63c   :  { %v866_v32 = vpop.permute.xlu1 %865 }
 0x689   :  { %v1346_v29 = vpop.f32.mrf.mxu0 }
 0x68a   :  { %954 = vrot.lane.b32.xlu1 %v1346_v29, %s1501_s24 }
 0x68b   :  { %v811_v30 = vpop.f32.mrf.mxu0 }
 0x68c   :  { %v1035_v31 = vpack.c.bf16 %v1346_v29, %v811_v30  ;;  %952 = vrot.lane.b32.xlu0 %v811_v30, %s1501_s24 }
 0x68e   :  { %1354 = vmatpush3.bf16.msra.mxu0 %v1035_v31 }
 0x690   :  { %991 = vperm.xlu0 %1388, %v811_v30  }
 0x694   :  { %995 = vperm.xlu0 %1388, %v1346_v29  }
 0x6a8   :  { %v844_v33 = vpop.trf.xlu1 }
 0x6a9   :  { %v871_v34 = vrot.slane %v844_v33, %v1603_v28 }
 0x6ab   :  { %v872_v7 = vadd.f32 %v871_v34, %v862_v35  ;;  %v873_v36 = vadd.f32 %v871_v34, %v866_v32 }
 0x6ad   :  { %v876_v39 = vmul.f32 0.01, %v872_v7  ;;  %v877_v40 = vmul.f32 0.01, %v873_v36  ;;  %vm874_vm0 = vcmp.gt.f32.partialorder %v872_v7, 0.0  ;;  %vm875_vm1 = vcmp.gt.f32.partialorder %v873_v36, 0.0 }
 0x6af   :  { %v878_v41 = vsel %vm874_vm0, %v872_v7, %v876_v39  ;;  %v879_v42 = vsel %vm875_vm1, %v873_v36, %v877_v40 }
 0x6b0   :  { %v880_v43 = vadd.f32 %v1609_v38, %v878_v41  ;;  %v881_v45 = vadd.f32 %v1607_v37, %v879_v42 }
 0x6b2   :  { %v882_v44 = vsel %vm215_vm4, %v880_v43, -inf  ;;  %v885_v46 = vsel %vm215_vm4, %v881_v45, -inf }
 0x6b3   :  { %883 = vmax.xlane.f32.xlu0 %v882_v44 }
 0x6b7   :  { %886 = vmax.xlane.f32.xlu0 %v885_v46 }
 0x6fc   :  { %v955_v48 = vpop.permute.xlu1 %954 }
 0x6fe   :  { %v953_v47 = vpop.permute.xlu0 %952 }
 0x6ff   :  { %958 = vxpose.xlu0.b32.start [1/2] (short) (narrow) %v953_v47, 8 }
 0x703   :  { %959 = vxpose.xlu0.b32.end [2/2] (short) (narrow) %v955_v48, 8 }
 0x70b   :  { %v992_v49 = vpop.permute.xlu0 %991 }
 0x70f   :  { %v996_v50 = vpop.permute.xlu0 %995 }
 0x73c   :  { %v884_v51 = vpop.xlane.xlu0 %883 }
 0x73d   :  { %v888_v52 = vsub.f32 %v880_v43, %v884_v51 }
 0x73f   :  { %v890_v53 = vmul.f32 1.442695, %v888_v52  ;;  %v1099_v52 = vld [vmem:[%s1751_s4] sm:$0xff] }
 0x740   :  { %v887_v54 = vpop.xlane.xlu0 %886 }
 0x741   :  { %1430 = vpow2.f32 %v890_v53  ;;  %v889_v55 = vsub.f32 %v881_v45, %v887_v54 }
 0x743   :  { %v892_v56 = vmul.f32 1.442695, %v889_v55 }
 0x745   :  { %1432 = vpow2.f32 %v892_v56 }
 0x74e   :  { %v1431_v57 = vpop.eup %1430 }
 0x74f   :  { %v894_v58 = vsel %vm215_vm4, %v1431_v57, 0.0 }
 0x750   :  { %895 = vadd.xlane.f32.xlu1 %v894_v58 }
 0x752   :  { %v1433_v59 = vpop.eup %1432 }
 0x753   :  { %v897_v60 = vsel %vm215_vm4, %v1433_v59, 0.0 }
 0x754   :  { %898 = vadd.xlane.f32.xlu0 %v897_v60 }
 0x77b   :  { %v974_v61 = vpop.trf.xlu0 }
 0x77c   :  { %v1001_v62 = vrot.slane %v974_v61, %v1603_v28 }
 0x77e   :  { %v1002_v63 = vadd.f32 %v1001_v62, %v992_v49  ;;  %v1003_v0 = vadd.f32 %v1001_v62, %v996_v50  ;;  %v1100_v50 = vld [vmem:[%s1751_s4 + $0x8] sm:$0xff]  ;;  %s1506_s4 = smov [#allocation6]  }
 0x77f   :  { %s1223_s5 = sshll.u32 %s1506_s4, 4  ;;  %s1224_s5 = int_to_ptr.vmem [resolvable:$true] %s1223_s5 }
 0x780   :  { %v1006_v1 = vmul.f32 0.01, %v1002_v63  ;;  %v1007_v2 = vmul.f32 0.01, %v1003_v0  ;;  %vm1004_vm2 = vcmp.gt.f32.partialorder %v1002_v63, 0.0  ;;  %vm1005_vm3 = vcmp.gt.f32.partialorder %v1003_v0, 0.0  ;;  %p1475_p6 = scmp.lt.s32.totalorder %s1224_s5, %s1224_s5 }
 0x781   :  { %s1470_s10 = scalar_lea.vmem %s1224_s5, 256 }
 0x782   :  { %v1008_v3 = vsel %vm1004_vm2, %v1002_v63, %v1006_v1  ;;  %v1009_v4 = vsel %vm1005_vm3, %v1003_v0, %v1007_v2  ;;  %p1471_p5 = scmp.ne.s32.totalorder %s1224_s5, %s1470_s10  ;;  %p1476_p7 = scmp.lt.s32.totalorder %s1470_s10, %s1470_s10 }
 0x783   :  { %v1010_v5 = vadd.f32 %v1609_v38, %v1008_v3  ;;  %v1011_v8 = vadd.f32 %v1607_v37, %v1009_v4 }
 0x784   :  { %p1477_p8 = por %p1476_p7, %p1475_p6 }
 0x785   :  { %v1012_v6 = vsel %vm215_vm4, %v1010_v5, -inf  ;;  %v1015_v9 = vsel %vm215_vm4, %v1011_v8, -inf }
 0x786   :  { %1013 = vmax.xlane.f32.xlu1 %v1012_v6  ;;  %p1478_p9 = pnand %p1477_p8, %p1471_p5 }
 0x78a   :  { %1016 = vmax.xlane.f32.xlu1 %v1015_v9 }
 0x7d9   :  { %v896_v10 = vpop.xlane.xlu1 %895 }
 0x7da   :  { %1434 = vrcp.f32 %v896_v10 }
 0x7dd   :  { %v899_v28 = vpop.xlane.xlu0 %898 }
 0x7de   :  { %1436 = vrcp.f32 %v899_v28 }
 0x7e7   :  { %v1435_v11 = vpop.eup %1434 }
 0x7e8   :  { %v902_v14 = vmul.f32 %v1435_v11, %v1431_v57 }
 0x7eb   :  { %v1437_v12 = vpop.eup %1436 }
 0x7ec   :  { %v903_v13 = vmul.f32 %v1437_v12, %v1433_v59 }
 0x7ee   :  { %v904_v15 = vpack.c.bf16 %v903_v13, %v902_v14 }
 0x7f0   :  { %1350 = vmatmul.mubr.msk.bf16.vlgmr.msra.gmra.mxu1 %vm215_vm4, %v904_v15 }
 0x80f   :  { %v1014_v38 = vpop.xlane.xlu1 %1013 }
 0x810   :  { %v1018_v16 = vsub.f32 %v1010_v5, %v1014_v38 }
 0x812   :  { %v1020_v17 = vmul.f32 1.442695, %v1018_v16 }
 0x813   :  { %v1017_v18 = vpop.xlane.xlu1 %1016 }
 0x814   :  { %1438 = vpow2.f32 %v1020_v17  ;;  %v1019_v37 = vsub.f32 %v1011_v8, %v1017_v18 }
 0x816   :  { %v1022_v19 = vmul.f32 1.442695, %v1019_v37 }
 0x818   :  { %1440 = vpow2.f32 %v1022_v19 }
 0x821   :  { %v1439_v22 = vpop.eup %1438 }
 0x822   :  { %v1024_v23 = vsel %vm215_vm4, %v1439_v22, 0.0 }
 0x823   :  { %1025 = vadd.xlane.f32.xlu1 %v1024_v23 }
 0x825   :  { %v1441_v24 = vpop.eup %1440 }
 0x826   :  { %v1027_v20 = vsel %vm215_vm4, %v1441_v24, 0.0 }
 0x827   :  { %1028 = vadd.xlane.f32.xlu1 %v1027_v20 }
 0x8ac   :  { %v1026_v25 = vpop.xlane.xlu1 %1025 }
 0x8ad   :  { %1442 = vrcp.f32 %v1026_v25 }
 0x8b0   :  { %v1029_v26 = vpop.xlane.xlu1 %1028  ;;  %v943_v27 = vpop.f32.mrf.mxu1 }
 0x8b1   :  { %1444 = vrcp.f32 %v1029_v26  ;;  %1080 = vst.msk [vmem:[#allocation6] sm:$0xff] %vm215_vm4, %v943_v27  ;;  %1363 = vmatprep.mubr.msk.f32.mxu1 %vm215_vm4, %v943_v27  ;;  %v1082_v30 = vsel %vm215_vm4, %v943_v27, 0.0 }
 0x8b2   :  { %v1351_v21 = vpop.f32.mrf.mxu1 }
 0x8b4   :  { %v946_v29 = vpop.f32.mrf.mxu1 }
 0x8b5   :  { %1081 = vst.msk [vmem:[#allocation6 + $0x8] sm:$0xff] %vm215_vm4, %v946_v29  ;;  %v1083_v31 = vsel %vm215_vm4, %v946_v29, 0.0 }
 0x8b6   :  { %v1084_v32 = vadd.f32 %v1083_v31, %v1082_v30  ;;  %v1352_v33 = vpop.f32.mrf.mxu1 }
 0x8b8   :  { %v1085_v34 = vrot.slane %v1084_v32, 4 }
 0x8ba   :  { %v1086_v35 = vadd.f32 %v1085_v34, %v1084_v32  ;;  %v1443_v7 = vpop.eup %1442 }
 0x8bb   :  { %v1032_v41 = vmul.f32 %v1443_v7, %v1439_v22 }
 0x8bc   :  { %v1087_v36 = vrot.slane %v1086_v35, 2 }
 0x8be   :  { %v1445_v39 = vpop.eup %1444  ;;  %v1088_v40 = vadd.f32 %v1087_v36, %v1086_v35 }
 0x8bf   :  { %v1033_v42 = vmul.f32 %v1445_v39, %v1441_v24 }
 0x8c0   :  { %v1089_v43 = vrot.slane %v1088_v40, 1 }
 0x8c1   :  { %v1034_v44 = vpack.c.bf16 %v1033_v42, %v1032_v41 }
 0x8c2   :  { %v1090_v45 = vadd.f32 %v1089_v43, %v1088_v40 }
 0x8c3   :  { %1356 = vmatmul.mubr.msk.bf16.vlgmr.msra.gmra.mxu0 %vm215_vm4, %v1034_v44 }
 0x8c4   :  { %v1257_v46 = vmul.f32 -0.0625, %v1090_v45 }
 0x8c6   :  { %v1094_v47 = vmul.f32 1.442695, %v1257_v46 }
 0x8c8   :  { %1446 = vpow2.f32 %v1094_v47 }
 0x8d5   :  { %v1447_v48 = vpop.eup %1446 }
 0x8d6   :  { %v1096_v49 = vadd.f32 1.0, %v1447_v48 }
 0x8d8   :  { %1448 = vrcp.f32 %v1096_v49 }
 0x8e5   :  { %v1449_v51 = vpop.eup %1448 }
 0x8e6   :  { %v1102_v53 = vmul.f32 %v1449_v51, %v1100_v50  ;;  %v1101_v55 = vmul.f32 %v1449_v51, %v1099_v52 }
 0x8e8   :  { %v1106_v54 = vsel %vm215_vm4, %v1102_v53, 0.0  ;;  %v1103_v56 = vsel %vm215_vm4, %v1101_v55, 0.0 }
 0x8e9   :  { %1107 = vadd.xlane.f32.xlu1 %v1106_v54 }
 0x8ed   :  { %1104 = vadd.xlane.f32.xlu1 %v1103_v56 }
 0x972   :  { %v1108_v57 = vpop.xlane.xlu1 %1107 }
 0x973   :  { %1359 = vmatprep.subr.mxu1 %v1108_v57 }
 0x974   :  { %1360 = vmatpush3.msra.mxu1 %v1108_v57 }
 0x976   :  { %v1105_v58 = vpop.xlane.xlu1 %1104 }
 0x977   :  { %1361 = vmatprep.subr.mxu1 %v1105_v58 }
 0x978   :  { %1362 = vmatpush3.msra.mxu1 %v1105_v58 }
 0x979   :  { %1364 = vmatmul.mubr.msk.f32.vlgmr.msra.gmra.mxu1 %vm215_vm4, %v946_v29 }
 0x983   :  { %v1073_v59 = vpop.f32.mrf.mxu0 }
 0x984   :  { %1366 = vmatprep.mubr.msk.f32.mxu1 %vm215_vm4, %v1073_v59 }
 0x985   :  { %v1357_v60 = vpop.f32.mrf.mxu0 }
 0x987   :  { %v1076_v61 = vpop.f32.mrf.mxu0 }
 0x988   :  { %1367 = vmatmul.mubr.msk.f32.gmra.mxu1 %vm215_vm4, %v1076_v61 }
 0x989   :  { %v1358_v62 = vpop.f32.mrf.mxu0 }
 0x98a   :  { %1481 = shalt.err (!%p1478_p9)
}
 0x98b   :  { %s1507_s11 = smov 128   ;;  %v1258_v63 = vld [vmem:[#allocation2] ss:$0 sm:$0xff]  ;;  %vm1213_vm4 = vcmask 7168  }
 0x98c   :  { %1229 = dma.vmem_to_hbm [thread:$0]  %s1224_s5, 256, %s1753_s6, [#allocation5], %s1507_s11, %s1507_s11, %s1504_s25  }
 0xa39   :  { %v1365_v0 = vpop.f32.mrf.mxu1 }
 0xa3a   :  { %v1200_v1 = vadd.f32 %v1365_v0, %v1258_v63 }
 0xa3b   :  { %v1194_v2 = vpop.f32.mrf.mxu1 }
 0xa3c   :  { %1215 = vst.msk [vmem:[%s1754_s7 + $0x8] sm:$0xff] %vm1213_vm4, %v1200_v1  ;;  %v1195_v3 = vadd.f32 %v1258_v63, %v1194_v2 }
 0xa3e   :  { %1214 = vst.msk [vmem:[%s1754_s7] sm:$0xff] %vm1213_vm4, %v1195_v3 }
 0xa48   :  { %v1368_v4 = vpop.f32.mrf.mxu1 }
 0xa49   :  { %v1210_v5 = vadd.f32 %v1368_v4, %v1258_v63 }
 0xa4a   :  { %v1204_v6 = vpop.f32.mrf.mxu1 }
 0xa4b   :  { %1217 = vst.msk [vmem:[%s1754_s7 + $0x18] sm:$0xff] %vm1213_vm4, %v1210_v5  ;;  %v1205_v8 = vadd.f32 %v1258_v63, %v1204_v6 }
 0xa4d   :  { %1216 = vst.msk [vmem:[%s1754_s7 + $0x10] sm:$0xff] %vm1213_vm4, %v1205_v8 }
 0xa4e   :  { %1492 = dma.done.wait [#allocation5], 256  }
 0xa4f   :  { %1493 = vsyncadd [#allocation5], 4294967040 }
 0xa50   :  { %1237 = vsyncpa [#allocation4], 1 }
 0xa51   :  { %1238 = vsyncpa [#allocation5], 1 }

</bundles_post_ra>
